<compile_context>
chip_gen: v7x
topology: tpu7x:2x2x1
jax: 0.10.0
libtpu: 0.0.40
codegen_flags: <defaults>
</compile_context>

<pallas_src>
import functools

import jax
import jax.numpy as jnp
from jax.experimental import pallas as pl
from jax.experimental.pallas import tpu as pltpu

EPS = 1e-5
NEG_SLOPE = 0.2


def _round_up(a, b):
    return -(-a // b) * b


def _conv_stats_kernel(p_ref, w_ref, conv_ref, stats_ref, *, tm, m_true):
    """Phase 1: conv-as-matmul (bf16 MXU, f32 acc) + masked per-tile BN partials."""
    i = pl.program_id(0)

    conv = jnp.dot(p_ref[...], w_ref[...], preferred_element_type=jnp.float32)  # [TM, TN] f32
    conv_ref[...] = conv.astype(conv_ref.dtype)                                 # stored bf16

    # Mask rows that are pure M-padding so they don't pollute the batch stats.
    row = i * tm + jax.lax.broadcasted_iota(jnp.int32, (tm, 1), 0)
    valid = row < m_true                                            # [TM, 1]
    cnt = jnp.maximum(jnp.minimum(m_true - i * tm, tm), 1).astype(jnp.float32)

    conv_m = jnp.where(valid, conv, 0.0)
    s = jnp.sum(conv_m, axis=0, keepdims=True)                      # [1, TN]
    tile_mean = s * (1.0 / cnt)
    centered = jnp.where(valid, conv - tile_mean, 0.0)
    css = jnp.sum(centered * centered, axis=0, keepdims=True)       # [1, TN]

    # Pack (sum, centered-SS) into an 8-sublane block: row 0 = sum, row 1 = css.
    pad = jnp.zeros((6, s.shape[1]), jnp.float32)
    stats_ref[...] = jnp.concatenate([s, css, pad], axis=0)


def _bn_lrelu_kernel(conv_ref, scale_ref, shift_ref, o_ref):
    """Phase 2: y = conv*scale + shift, LeakyReLU(0.2).  Memory-bound stream."""
    y = conv_ref[...].astype(jnp.float32) * scale_ref[...] + shift_ref[...]
    o_ref[...] = jnp.where(y >= 0.0, y, NEG_SLOPE * y).astype(o_ref.dtype)


def _im2col(x, kh, kw, stride):
    """x: [N, C, H, W] -> patches [N*OH*OW, C*KH*KW] (C slowest, then kh, kw)."""
    N, C, H, W = x.shape
    OH = (H - kh) // stride + 1
    OW = (W - kw) // stride + 1
    cols = []
    for i in range(kh):
        for j in range(kw):
            cols.append(x[:, :, i:i + stride * OH:stride, j:j + stride * OW:stride])
    cols = jnp.stack(cols, axis=0).reshape(kh, kw, N, C, OH, OW)
    cols = cols.transpose(2, 4, 5, 3, 0, 1).reshape(N * OH * OW, C * kh * kw)
    return cols, OH, OW


def ck_block_forward(x, weight, gamma, beta, *, kernel_size=4, stride=2):
    """x: [N, Cin, H, W] (NCHW). weight: [Cout, Cin, KH, KW]. Returns NCHW."""
    N, Cin, H, W = x.shape
    Cout = weight.shape[0]
    kh = kw = kernel_size

    # im2col in bf16 (MXU-native operands; f32 accumulation happens in-kernel).
    patches, OH, OW = _im2col(x.astype(jnp.bfloat16), kh, kw, stride)
    M, K = patches.shape
    w2d = weight.reshape(Cout, Cin * kh * kw).T.astype(jnp.bfloat16)   # [K, Cout]

    # Lane-dense padding.
    K_pad = _round_up(K, 128)
    C_pad = _round_up(Cout, 128)

    # Cout tile: largest divisor of C_pad (capped at 512) whose double-buffered
    # weight tile stays small.  For typical Cout this gives g_n == 1: the weight
    # block is loaded once and the big patch strip is read exactly once.
    TN = 128
    for cand in (C_pad, 512, 256, 128):
        if cand <= C_pad and C_pad % cand == 0 and 2 * K_pad * cand * 2 <= (12 << 20):
            TN = cand
            break

    # M tile: target 512 rows; shrink to keep double-buffered tiles ~<=32 MiB.
    TM = min(512, _round_up(M, 8))

    def _est(tm):
        return 2 * (tm * K_pad * 2 + K_pad * TN * 2 + tm * TN * 2 + 8 * TN * 4)

    while _est(TM) > (32 << 20) and TM > 128:
        TM = max(128, _round_up(TM // 2, 8))

    M_pad = _round_up(M, TM)
    g_m = M_pad // TM
    g_n = C_pad // TN

    patches = jnp.pad(patches, ((0, M_pad - M), (0, K_pad - K)))
    w2d = jnp.pad(w2d, ((0, K_pad - K), (0, C_pad - Cout)))

    vmem1 = min(48 << 20, max(16 << 20, _est(TM) + (8 << 20)))

    # ---- Phase 1: conv matmul + per-tile BN partials -------------------------
    conv_out, stats = pl.pallas_call(
        functools.partial(_conv_stats_kernel, tm=TM, m_true=M),
        grid=(g_m, g_n),
        in_specs=[
            pl.BlockSpec((TM, K_pad), lambda i, j: (i, 0)),
            pl.BlockSpec((K_pad, TN), lambda i, j: (0, j)),
        ],
        out_specs=(
            pl.BlockSpec((TM, TN), lambda i, j: (i, j)),
            pl.BlockSpec((8, TN), lambda i, j: (i, j)),
        ),
        out_shape=(
            jax.ShapeDtypeStruct((M_pad, C_pad), jnp.bfloat16),
            jax.ShapeDtypeStruct((8 * g_m, C_pad), jnp.float32),
        ),
        compiler_params=pltpu.CompilerParams(
            dimension_semantics=("parallel", "parallel"),
            vmem_limit_bytes=vmem1),
        cost_estimate=pl.CostEstimate(
            flops=2 * M_pad * K_pad * C_pad + 6 * M_pad * C_pad,
            transcendentals=0,
            bytes_accessed=(M_pad * K_pad * 2 + g_m * K_pad * C_pad * 2
                            + M_pad * C_pad * 2 + 8 * g_m * C_pad * 4)),
    )(patches, w2d)

    # ---- Tiny O(Cout) combine of per-tile partials (exact ANOVA identity) ----
    stats = stats.reshape(g_m, 8, C_pad)
    tile_sum = stats[:, 0, :]                                         # [g_m, C_pad]
    tile_css = stats[:, 1, :]
    counts = jnp.minimum(M - jnp.arange(g_m) * TM, TM).astype(jnp.float32)
    mean = jnp.sum(tile_sum, axis=0) / M
    tile_mean = tile_sum / counts[:, None]
    var = (jnp.sum(tile_css, axis=0)
           + jnp.sum(counts[:, None] * jnp.square(tile_mean - mean[None, :]), axis=0)) / M
    inv_std = jax.lax.rsqrt(var + EPS)

    gamma_pad = jnp.pad(gamma.astype(jnp.float32), (0, C_pad - Cout), constant_values=1.0)
    beta_pad = jnp.pad(beta.astype(jnp.float32), (0, C_pad - Cout))
    scale_flat = gamma_pad * inv_std
    shift_flat = beta_pad - mean * scale_flat
    scale2d = scale_flat.reshape(1, C_pad)
    shift2d = shift_flat.reshape(1, C_pad)

    # ---- Phase 2: normalize + affine + LeakyReLU (streaming) -----------------
    out_bytes = jnp.dtype(x.dtype).itemsize
    vmem2 = min(48 << 20, max(16 << 20,
                              2 * (TM * TN * 2 + TM * TN * out_bytes + 2 * TN * 4) + (8 << 20)))
    out_flat = pl.pallas_call(
        _bn_lrelu_kernel,
        grid=(g_m, g_n),
        in_specs=[
            pl.BlockSpec((TM, TN), lambda i, j: (i, j)),
            pl.BlockSpec((1, TN), lambda i, j: (0, j)),
            pl.BlockSpec((1, TN), lambda i, j: (0, j)),
        ],
        out_specs=pl.BlockSpec((TM, TN), lambda i, j: (i, j)),
        out_shape=jax.ShapeDtypeStruct((M_pad, C_pad), x.dtype),
        compiler_params=pltpu.CompilerParams(
            dimension_semantics=("parallel", "parallel"),
            vmem_limit_bytes=vmem2),
        cost_estimate=pl.CostEstimate(
            flops=3 * M_pad * C_pad,
            transcendentals=0,
            bytes_accessed=M_pad * C_pad * (2 + out_bytes) + 2 * C_pad * 4),
    )(conv_out, scale2d, shift2d)

    # [M, Cout] -> [N, OH, OW, Cout] -> NCHW [N, Cout, OH, OW]
    return out_flat[:M, :Cout].reshape(N, OH, OW, Cout).transpose(0, 3, 1, 2)


if __name__ == "__main__":
    key = jax.random.PRNGKey(0)
    k_x, k_w = jax.random.split(key)

    N, Cin, H, W = 2, 4, 16, 16
    Cout, KS, STRIDE = 8, 4, 2

    x = jax.random.normal(k_x, (N, Cin, H, W), dtype=jnp.float32)
    fan_in = Cin * KS * KS
    weight = jax.random.normal(k_w, (Cout, Cin, KS, KS), dtype=jnp.float32) / jnp.sqrt(fan_in)
    gamma = jnp.ones((Cout,), dtype=jnp.float32)   # BatchNorm2d default affine
    beta = jnp.zeros((Cout,), dtype=jnp.float32)

    out = ck_block_forward(x, weight, gamma, beta, kernel_size=KS, stride=STRIDE)
    out = jax.block_until_ready(out)

    OH = (H - KS) // STRIDE + 1
    OW = (W - KS) // STRIDE + 1
    assert out.shape == (N, Cout, OH, OW)
    assert bool(jnp.isfinite(out).all())
    print("KERNEL_OK")
</pallas_src>

<mosaic_0001>
module attributes {stable_mosaic.version = 11 : i64} {
  func.func @_conv_stats_kernel(%arg0: i32, %arg1: i32, %arg2: memref<104x128xbf16, #tpu.memory_space<vmem>>, %arg3: memref<128x128xbf16, #tpu.memory_space<vmem>>, %arg4: memref<104x128xbf16, #tpu.memory_space<vmem>>, %arg5: memref<8x128xf32, #tpu.memory_space<vmem>>) attributes {dimension_semantics = [#tpu.dimension_semantics<parallel>, #tpu.dimension_semantics<parallel>], iteration_bounds = array<i64: 1, 1>, scalar_prefetch = 0 : i64, scratch_operands = 0 : i64, tpu.core_type = #tpu.core_type<tc>, window_params = [{transform_indices = @transform_0, window_bounds = array<i64: 104, 128>}, {transform_indices = @transform_1, window_bounds = array<i64: 128, 128>}, {transform_indices = @transform_2, window_bounds = array<i64: 104, 128>}, {transform_indices = @transform_3, window_bounds = array<i64: 8, 128>}]} {
    %c0 = arith.constant 0 : index
    %c0_0 = arith.constant 0 : index
    %0 = vector.load %arg2[%c0, %c0_0] : memref<104x128xbf16, #tpu.memory_space<vmem>>, vector<104x128xbf16>
    %c0_1 = arith.constant 0 : index
    %c0_2 = arith.constant 0 : index
    %1 = vector.load %arg3[%c0_1, %c0_2] : memref<128x128xbf16, #tpu.memory_space<vmem>>, vector<128x128xbf16>
    %cst = arith.constant dense<0.000000e+00> : vector<104x128xf32>
    %2 = tpu.matmul %0, %1, %cst {dimension_numbers = #tpu.dot_dimension_numbers<[1], [0], [0], [1], [0, 0, 1, 1], [], []>} : vector<104x128xbf16>, vector<128x128xbf16>, vector<104x128xf32> -> vector<104x128xf32>
    %3 = arith.truncf %2 : vector<104x128xf32> to vector<104x128xbf16>
    %c0_3 = arith.constant 0 : index
    %c0_4 = arith.constant 0 : index
    %4 = vector.load %arg4[%c0_3, %c0_4] : memref<104x128xbf16, #tpu.memory_space<vmem>>, vector<104x128xbf16>
    tpu.vector_store %arg4[%c0_3, %c0_4], %3 {strides = array<i32>} : memref<104x128xbf16, #tpu.memory_space<vmem>>, vector<104x128xbf16>,
    %c104_i32 = arith.constant 104 : i32
    %5 = arith.muli %arg0, %c104_i32 : i32
    %6 = tpu.iota {dimensions = array<i32: 0>} : vector<104x1xi32>
    %7 = vector.broadcast %5 : i32 to vector<104x1xi32>
    %8 = arith.addi %7, %6 : vector<104x1xi32>
    %c98_i32 = arith.constant 98 : i32
    %9 = vector.broadcast %c98_i32 : i32 to vector<104x1xi32>
    %10 = arith.cmpi slt, %8, %9 : vector<104x1xi32>
    %c104_i32_5 = arith.constant 104 : i32
    %11 = arith.muli %arg0, %c104_i32_5 : i32
    %c98_i32_6 = arith.constant 98 : i32
    %12 = arith.subi %c98_i32_6, %11 : i32
    %c104_i32_7 = arith.constant 104 : i32
    %13 = arith.minsi %12, %c104_i32_7 : i32
    %c1_i32 = arith.constant 1 : i32
    %14 = arith.maxsi %13, %c1_i32 : i32
    %15 = arith.sitofp %14 : i32 to f32
    %cst_8 = arith.constant 0.000000e+00 : f32
    %16 = vector.shape_cast %10 : vector<104x1xi1> to vector<104x1xi1>
    %17 = vector.broadcast %16 : vector<104x1xi1> to vector<104x128xi1>
    %18 = vector.broadcast %cst_8 : f32 to vector<104x128xf32>
    %19 = arith.select %17, %2, %18 : vector<104x128xi1>, vector<104x128xf32>
    %cst_9 = arith.constant dense<0.000000e+00> : vector<128xf32>
    %20 = vector.multi_reduction <add>, %19, %cst_9 [0] : vector<104x128xf32> to vector<128xf32>
    %21 = vector.shape_cast %20 : vector<128xf32> to vector<1x128xf32>
    %cst_10 = arith.constant 1.000000e+00 : f32
    %22 = arith.divf %cst_10, %15 : f32
    %23 = vector.broadcast %22 : f32 to vector<1x128xf32>
    %24 = arith.mulf %21, %23 : vector<1x128xf32>
    %25 = vector.broadcast %24 : vector<1x128xf32> to vector<104x128xf32>
    %26 = arith.subf %2, %25 : vector<104x128xf32>
    %cst_11 = arith.constant 0.000000e+00 : f32
    %27 = vector.shape_cast %10 : vector<104x1xi1> to vector<104x1xi1>
    %28 = vector.broadcast %27 : vector<104x1xi1> to vector<104x128xi1>
    %29 = vector.broadcast %cst_11 : f32 to vector<104x128xf32>
    %30 = arith.select %28, %26, %29 : vector<104x128xi1>, vector<104x128xf32>
    %31 = arith.mulf %30, %30 : vector<104x128xf32>
    %cst_12 = arith.constant dense<0.000000e+00> : vector<128xf32>
    %32 = vector.multi_reduction <add>, %31, %cst_12 [0] : vector<104x128xf32> to vector<128xf32>
    %33 = vector.shape_cast %32 : vector<128xf32> to vector<1x128xf32>
    %cst_13 = arith.constant 0.000000e+00 : f32
    %34 = vector.broadcast %cst_13 : f32 to vector<6x128xf32>
    %35 = tpu.concatenate %21, %33, %34 in 0 : vector<1x128xf32>, vector<1x128xf32>, vector<6x128xf32> -> vector<8x128xf32>
    %c0_14 = arith.constant 0 : index
    %c0_15 = arith.constant 0 : index
    %36 = vector.load %arg5[%c0_14, %c0_15] : memref<8x128xf32, #tpu.memory_space<vmem>>, vector<8x128xf32>
    tpu.vector_store %arg5[%c0_14, %c0_15], %35 {strides = array<i32>} : memref<8x128xf32, #tpu.memory_space<vmem>>, vector<8x128xf32>,
    return
  }
  func.func @transform_0(%arg0: i32, %arg1: i32) -> (i32, i32) {
    %c0_i32 = arith.constant 0 : i32
    %c0_i32_0 = arith.constant 0 : i32
    return %arg0, %c0_i32 : i32, i32
  }
  func.func @transform_1(%arg0: i32, %arg1: i32) -> (i32, i32) {
    %c0_i32 = arith.constant 0 : i32
    %c0_i32_0 = arith.constant 0 : i32
    return %c0_i32, %arg1 : i32, i32
  }
  func.func @transform_2(%arg0: i32, %arg1: i32) -> (i32, i32) {
    %c0_i32 = arith.constant 0 : i32
    return %arg0, %arg1 : i32, i32
  }
  func.func @transform_3(%arg0: i32, %arg1: i32) -> (i32, i32) {
    %c0_i32 = arith.constant 0 : i32
    return %arg0, %arg1 : i32, i32
  }
}

</mosaic_0001>

<bundles_post_ra>
// kernel: tpu_custom_call.1
= control target key start
LH: loop header
LB: loop body
LE: loop exit
PB: predicated region body
PF: predicated region fallthrough
CT: control target
= control target key end

     0   :  { %9 = vsyncpa [#allocation3], 0  ;;  %s934_s0 = inlined_call_operand.hbm [shape: bf16[104,128], index: 0, kind: input, shape index: {}]   ;;  %s935_s1 = inlined_call_operand.hbm [shape: bf16[128,128], index: 1, kind: input, shape index: {}]   ;;  %s936_s2 = inlined_call_operand.hbm [shape: bf16[104,128], index: 2, kind: output, shape index: {0}]   ;;  %s937_s3 = inlined_call_operand.hbm [shape: f32[8,128], index: 3, kind: output, shape index: {1}]  }
   0x1   :  { %10 = vsyncpa [#allocation6], 0 }
   0x2   :  { %11 = vsyncpa [#allocation4], 0 }
   0x3   :  { %12 = vsyncpa [#allocation9], 0  ;;  %s789_s12 = smov [#allocation2]   ;;  %s693_s16 = scalar_lea.hbm %s934_s0, 832 }
   0x4   :  { %s18_s13 = sshll.u32 %s789_s12, 4  ;;  %p694_p0 = scmp.ne.s32.totalorder %s934_s0, %s693_s16  ;;  %s19_s13 = int_to_ptr.vmem [resolvable:$true] %s18_s13 }
   0x5   :  { %p697_p1 = scmp.lt.u32.totalorder %s693_s16, %s934_s0 }
   0x7   :  { %p699_p2 = pnand %p697_p1, %p694_p0 }
   0x9   :  { %702 = shalt.err (!%p699_p2)
}
   0xa   :  { %s703_s21 = scalar_lea.vmem %s19_s13, 832  ;;  %p708_p4 = scmp.lt.s32.totalorder %s19_s13, %s19_s13 }
   0xb   :  { %p704_p3 = scmp.ne.s32.totalorder %s19_s13, %s703_s21  ;;  %p709_p5 = scmp.lt.s32.totalorder %s703_s21, %s703_s21 }
   0xd   :  { %p710_p6 = por %p709_p5, %p708_p4 }
   0xf   :  { %p711_p7 = pnand %p710_p6, %p704_p3 }
  0x11   :  { %714 = shalt.err (!%p711_p7)
}
  0x12   :  { %s790_s22 = smov 64   ;;  %s791_s23 = smov 4  }
  0x13   :  { %24 = dma.hbm_to_vmem [thread:$0]  %s934_s0, 832, %s19_s13, [#allocation3], %s790_s22, %s790_s22, %s791_s23  }
  0x14   :  { %s792_s26 = smov [#allocation5]   ;;  %s715_s30 = scalar_lea.hbm %s935_s1, 1024 }
  0x15   :  { %s30_s27 = sshll.u32 %s792_s26, 4  ;;  %p716_p8 = scmp.ne.s32.totalorder %s935_s1, %s715_s30  ;;  %s31_s27 = int_to_ptr.vmem [resolvable:$true] %s30_s27 }
  0x16   :  { %p719_p9 = scmp.lt.u32.totalorder %s715_s30, %s935_s1 }
  0x18   :  { %p721_p10 = pnand %p719_p9, %p716_p8 }
  0x1a   :  { %724 = shalt.err (!%p721_p10)
}
  0x1b   :  { %s725_s8 = scalar_lea.vmem %s31_s27, 1024  ;;  %p730_p12 = scmp.lt.s32.totalorder %s31_s27, %s31_s27 }
  0x1c   :  { %p726_p11 = scmp.ne.s32.totalorder %s31_s27, %s725_s8  ;;  %p731_p13 = scmp.lt.s32.totalorder %s725_s8, %s725_s8 }
  0x1e   :  { %p732_p0 = por %p731_p13, %p730_p12 }
  0x20   :  { %p733_p1 = pnand %p732_p0, %p726_p11 }
  0x22   :  { %736 = shalt.err (!%p733_p1)
}
  0x23   :  { %36 = dma.hbm_to_vmem [thread:$0]  %s935_s1, 1024, %s31_s27, [#allocation6], %s790_s22, %s790_s22, %s791_s23  }
  0x24   :  { %781 = dma.done.wait [#allocation3], 832  }
  0x25   :  { %782 = vsyncadd [#allocation3], 4294966464 }
  0x26   :  { %783 = dma.done.wait [#allocation6], 1024  }
  0x27   :  { %784 = vsyncadd [#allocation6], 4294966272  ;;  %v793_v0 = vmov 0.0   ;;  %vm794_vm0 = vmmov 0   ;;  %v678_v1 = vld [vmem:[#allocation5] sm:$0xff]   ;;  %v679_v2 = vld [vmem:[#allocation5 + $0x8] sm:$0xff]   ;;  %v316_v50 = vlaneseq }
  0x28   :  { %610 = vmatprep.subr.bf16.mxu0 %v793_v0  ;;  %654 = vmatprep.subr.bf16.mxu1 %v793_v0  ;;  %v680_v3 = vld [vmem:[#allocation5 + $0x10] sm:$0xff]   ;;  %v681_v4 = vld [vmem:[#allocation5 + $0x18] sm:$0xff]   ;;  %v682_v5 = vld [vmem:[#allocation5 + $0x20] sm:$0xff]   ;;  %s795_s1 = smov [#allocation7]  }
  0x29   :  { %626 = vmatprep.mubr.msk.bf16.mxu0 %vm794_vm0, %v793_v0  ;;  %642 = vmatprep.mubr.msk.bf16.mxu1 %vm794_vm0, %v793_v0  ;;  %v683_v6 = vld [vmem:[#allocation5 + $0x28] sm:$0xff]   ;;  %v684_v7 = vld [vmem:[#allocation5 + $0x30] sm:$0xff]   ;;  %v685_v8 = vld [vmem:[#allocation5 + $0x38] sm:$0xff]   ;;  %v317_v52 = vshrl.u32 %v316_v50, 7  ;;  %s492_s10 = sshll.u32 %s795_s1, 4  ;;  %s493_s10 = int_to_ptr.vmem [resolvable:$true] %s492_s10 }
  0x2a   :  { %611 = vmatpush3.bf16.msra.mxu0 %v678_v1  ;;  %662 = vmatpush3.bf16.msra.mxu1 %v678_v1  ;;  %v686_v9 = vld [vmem:[#allocation2] sm:$0xff]   ;;  %v687_v11 = vld [vmem:[#allocation2 + $0x8] sm:$0xff]   ;;  %v688_v13 = vld [vmem:[#allocation2 + $0x10] sm:$0xff]   ;;  %s737_s11 = scalar_lea.vmem %s493_s10, 832  ;;  %p742_p3 = scmp.lt.s32.totalorder %s493_s10, %s493_s10 }
  0x2b   :  { %612 = vmatprep.subr.bf16.mxu0 %v793_v0  ;;  %655 = vmatprep.subr.bf16.mxu1 %v793_v0  ;;  %v689_v10 = vld [vmem:[#allocation2 + $0x20] sm:$0xff]   ;;  %v691_v12 = vld [vmem:[#allocation2 + $0x28] sm:$0xff]   ;;  %v692_v14 = vld [vmem:[#allocation2 + $0x30] ss:$0 sps:$4 sm:$0xff]   ;;  %v886_v60 = vadd.s32 96, %v317_v52  ;;  %p738_p2 = scmp.ne.s32.totalorder %s493_s10, %s737_s11  ;;  %p743_p4 = scmp.lt.s32.totalorder %s737_s11, %s737_s11 }
  0x2c   :  { %v690_v15 = vld [vmem:[#allocation2 + $0x18] sm:$0xff]  }
  0x2d   :  { %p744_p5 = por %p743_p4, %p742_p3 }
  0x2e   :  { %613 = vmatpush3.bf16.msra.mxu0 %v679_v2  ;;  %663 = vmatpush3.bf16.msra.mxu1 %v679_v2 }
  0x2f   :  { %614 = vmatprep.subr.bf16.mxu0 %v793_v0  ;;  %656 = vmatprep.subr.bf16.mxu1 %v793_v0  ;;  %p745_p6 = pnand %p744_p5, %p738_p2 }
  0x32   :  { %615 = vmatpush3.bf16.msra.mxu0 %v680_v3  ;;  %664 = vmatpush3.bf16.msra.mxu1 %v680_v3 }
  0x33   :  { %616 = vmatprep.subr.bf16.mxu0 %v793_v0  ;;  %657 = vmatprep.subr.bf16.mxu1 %v793_v0 }
  0x36   :  { %617 = vmatpush3.bf16.msra.mxu0 %v681_v4  ;;  %665 = vmatpush3.bf16.msra.mxu1 %v681_v4 }
  0x37   :  { %618 = vmatprep.subr.bf16.mxu0 %v793_v0  ;;  %658 = vmatprep.subr.bf16.mxu1 %v793_v0 }
  0x3a   :  { %619 = vmatpush3.bf16.msra.mxu0 %v682_v5  ;;  %666 = vmatpush3.bf16.msra.mxu1 %v682_v5 }
  0x3b   :  { %620 = vmatprep.subr.bf16.mxu0 %v793_v0  ;;  %659 = vmatprep.subr.bf16.mxu1 %v793_v0 }
  0x3e   :  { %621 = vmatpush3.bf16.msra.mxu0 %v683_v6  ;;  %667 = vmatpush3.bf16.msra.mxu1 %v683_v6 }
  0x3f   :  { %622 = vmatprep.subr.bf16.mxu0 %v793_v0  ;;  %660 = vmatprep.subr.bf16.mxu1 %v793_v0 }
  0x42   :  { %623 = vmatpush3.bf16.msra.mxu0 %v684_v7  ;;  %668 = vmatpush3.bf16.msra.mxu1 %v684_v7 }
  0x43   :  { %624 = vmatprep.subr.bf16.mxu0 %v793_v0  ;;  %661 = vmatprep.subr.bf16.mxu1 %v793_v0 }
  0x46   :  { %625 = vmatpush3.bf16.msra.mxu0 %v685_v8  ;;  %669 = vmatpush3.bf16.msra.mxu1 %v685_v8 }
  0x49   :  { %627 = vmatmul.mubr.bf16.vlgmr.msra.gmra.mrb[0].mxu0 %v686_v9  ;;  %643 = vmatmul.mubr.bf16.vlgmr.msra.gmra.mrb[0].mxu1 %v689_v10 }
  0x4a   :  { %630 = vmatprep.mubr.msk.bf16.mxu0 %vm794_vm0, %v793_v0  ;;  %646 = vmatprep.mubr.msk.bf16.mxu1 %vm794_vm0, %v793_v0 }
  0x51   :  { %631 = vmatmul.mubr.bf16.gmra.mrb[4].mxu0 %v687_v11  ;;  %647 = vmatmul.mubr.bf16.gmra.mrb[4].mxu1 %v691_v12 }
  0x52   :  { %634 = vmatprep.mubr.msk.bf16.mxu0 %vm794_vm0, %v793_v0  ;;  %650 = vmatprep.mubr.msk.bf16.mxu1 %vm794_vm0, %v793_v0 }
  0x59   :  { %635 = vmatmul.mubr.bf16.gmra.mrb[8].mxu0 %v688_v13  ;;  %651 = vmatmul.mubr.bf16.gmra.mrb[8].mxu1 %v692_v14 }
  0x5a   :  { %638 = vmatprep.mubr.msk.bf16.mxu0 %vm794_vm0, %v793_v0 }
  0x61   :  { %639 = vmatmul.mubr.bf16.gmra.mrb[12].mxu0 %v690_v15 }
 0x11c   :  { %v854_v16 = vpop.f32.mrb[0].mxu0  ;;  %v856_v17 = vpop.f32.mrb[0].mxu1 }
 0x11d   :  { %v628_v18 = vpop.f32.mrb[1].mxu0  ;;  %v644_v19 = vpop.f32.mrb[1].mxu1 }
 0x11e   :  { %v858_v20 = vpop.f32.mrb[2].mxu0  ;;  %v860_v21 = vpop.f32.mrb[2].mxu1 }
 0x11f   :  { %v563_v22 = vpack.c.bf16 %v858_v20, %v854_v16  ;;  %v402_v23 = vadd.f32 %v858_v20, %v854_v16  ;;  %v629_v24 = vpop.f32.mrb[3].mxu0  ;;  %v583_v25 = vpack.c.bf16 %v860_v21, %v856_v17  ;;  %v645_v26 = vpop.f32.mrb[3].mxu1 }
 0x121   :  { %564 = vst [vmem:[#allocation7] sm:$0xff] %v563_v22   ;;  %593 = vst [vmem:[#allocation7 + $0x20] sm:$0xff] %v583_v25  }
 0x124   :  { %v868_v27 = vpop.f32.mrb[4].mxu0  ;;  %v870_v28 = vpop.f32.mrb[4].mxu1 }
 0x125   :  { %v403_v29 = vadd.f32 %v402_v23, %v868_v27  ;;  %v632_v30 = vpop.f32.mrb[5].mxu0  ;;  %v648_v31 = vpop.f32.mrb[5].mxu1 }
 0x126   :  { %v873_v32 = vpop.f32.mrb[6].mxu0  ;;  %v875_v33 = vpop.f32.mrb[6].mxu1 }
 0x127   :  { %v568_v34 = vpack.c.bf16 %v873_v32, %v868_v27  ;;  %v404_v35 = vadd.f32 %v403_v29, %v873_v32  ;;  %v633_v36 = vpop.f32.mrb[7].mxu0  ;;  %v588_v37 = vpack.c.bf16 %v875_v33, %v870_v28  ;;  %v649_v38 = vpop.f32.mrb[7].mxu1 }
 0x129   :  { %590 = vst [vmem:[#allocation7 + $0x8] sm:$0xff] %v568_v34   ;;  %594 = vst [vmem:[#allocation7 + $0x28] sm:$0xff] %v588_v37  }
 0x12c   :  { %v211_v39 = vpop.f32.mrb[8].mxu0  ;;  %v882_v40 = vpop.f32.mrb[8].mxu1 }
 0x12d   :  { %v405_v41 = vadd.f32 %v404_v35, %v211_v39  ;;  %v636_v42 = vpop.f32.mrb[9].mxu0  ;;  %v559_v43 = vpack.c.bf16 %v882_v40, %v882_v40  ;;  %v652_v44 = vpop.f32.mrb[9].mxu1 }
 0x12e   :  { %v214_v45 = vpop.f32.mrb[10].mxu0  ;;  %v246_v46 = vpop.f32.mrb[10].mxu1 }
 0x12f   :  { %v573_v47 = vpack.c.bf16 %v214_v45, %v211_v39  ;;  %v406_v48 = vadd.f32 %v405_v41, %v214_v45  ;;  %v637_v49 = vpop.f32.mrb[11].mxu0  ;;  %314 = vst [vmem:[#allocation7 + $0x30] sm:$0xf] %v559_v43  ;;  %v653_v51 = vpop.f32.mrb[11].mxu1 }
 0x131   :  { %591 = vst [vmem:[#allocation7 + $0x10] sm:$0xff] %v573_v47  }
 0x134   :  { %v219_v53 = vpop.f32.mrb[12].mxu0 }
 0x135   :  { %v407_v54 = vadd.f32 %v406_v48, %v219_v53  ;;  %v640_v55 = vpop.f32.mrb[13].mxu0 }
 0x136   :  { %v222_v56 = vpop.f32.mrb[14].mxu0 }
 0x137   :  { %v578_v57 = vpack.c.bf16 %v222_v56, %v219_v53  ;;  %v408_v58 = vadd.f32 %v407_v54, %v222_v56  ;;  %v641_v59 = vpop.f32.mrb[15].mxu0 }
 0x139   :  { %592 = vst [vmem:[#allocation7 + $0x18] sm:$0xff] %v578_v57   ;;  %v409_v61 = vadd.f32 %v408_v58, %v856_v17 }
 0x13a   :  { %748 = shalt.err (!%p745_p6)
}
 0x13b   :  { %s749_s14 = scalar_lea.hbm %s936_s2, 832 }
 0x13c   :  { %p750_p7 = scmp.ne.s32.totalorder %s936_s2, %s749_s14  ;;  %p753_p8 = scmp.lt.u32.totalorder %s749_s14, %s936_s2 }
 0x13e   :  { %p755_p9 = pnand %p753_p8, %p750_p7 }
 0x140   :  { %758 = shalt.err (!%p755_p9)
}
 0x141   :  { %498 = dma.vmem_to_hbm [thread:$0]  %s493_s10, 832, %s936_s2, [#allocation4], %s790_s22, %s790_s22, %s791_s23   ;;  %v410_v62 = vadd.f32 %v409_v61, %v860_v21  ;;  %vm356_vm1 = vcmp.lt.s32.totalorder %v886_v60, 98  ;;  %vm482_vm2 = vcmask 1040384   ;;  %vm484_vm3 = vcmask 1041408  }
 0x142   :  { %v401_v0 = vsel %vm356_vm1, %v882_v40, 0.0  ;;  %s796_s2 = smov [#allocation8]  }
 0x143   :  { %v411_v63 = vadd.f32 %v410_v62, %v870_v28  ;;  %s505_s21 = sshll.u32 %s796_s2, 4  ;;  %s506_s21 = int_to_ptr.vmem [resolvable:$true] %s505_s21 }
 0x144   :  { %s759_s22 = scalar_lea.vmem %s506_s21, 128  ;;  %p764_p11 = scmp.lt.s32.totalorder %s506_s21, %s506_s21 }
 0x145   :  { %v412_v1 = vadd.f32 %v411_v63, %v875_v33  ;;  %p760_p10 = scmp.ne.s32.totalorder %s506_s21, %s759_s22  ;;  %p765_p12 = scmp.lt.s32.totalorder %s759_s22, %s759_s22 }
 0x147   :  { %v413_v2 = vadd.f32 %v412_v1, %v401_v0  ;;  %p766_p13 = por %p765_p12, %p764_p11 }
 0x149   :  { %v414_v3 = vrot.slane %v413_v2, 4  ;;  %p767_p0 = pnand %p766_p13, %p760_p10 }
 0x14b   :  { %v415_v4 = vadd.f32 %v414_v3, %v413_v2 }
 0x14d   :  { %v416_v5 = vrot.slane %v415_v4, 2 }
 0x14f   :  { %v417_v6 = vadd.f32 %v416_v5, %v415_v4 }
 0x151   :  { %v418_v7 = vrot.slane %v417_v6, 1 }
 0x153   :  { %v419_v8 = vadd.f32 %v418_v7, %v417_v6 }
 0x155   :  { %v424_v9 = vmul.f32 0.010204081, %v419_v8 }
 0x157   :  { %v425_v10 = vsub.f32 %v854_v16, %v424_v9  ;;  %v426_v11 = vsub.f32 %v858_v20, %v424_v9  ;;  %v427_v12 = vsub.f32 %v868_v27, %v424_v9  ;;  %v428_v13 = vsub.f32 %v873_v32, %v424_v9 }
 0x158   :  { %v429_v14 = vsub.f32 %v211_v39, %v424_v9  ;;  %v430_v15 = vsub.f32 %v214_v45, %v424_v9  ;;  %v431_v18 = vsub.f32 %v219_v53, %v424_v9  ;;  %v432_v19 = vsub.f32 %v222_v56, %v424_v9 }
 0x159   :  { %v433_v22 = vsub.f32 %v856_v17, %v424_v9  ;;  %v434_v23 = vsub.f32 %v860_v21, %v424_v9  ;;  %v435_v24 = vsub.f32 %v870_v28, %v424_v9  ;;  %v436_v25 = vsub.f32 %v875_v33, %v424_v9 }
 0x15a   :  { %v437_v16 = vsub.f32 %v882_v40, %v424_v9  ;;  %v451_v26 = vmul.f32 %v425_v10, %v425_v10  ;;  %v452_v20 = vmul.f32 %v426_v11, %v426_v11  ;;  %v453_v29 = vmul.f32 %v427_v12, %v427_v12 }
 0x15b   :  { %v454_v30 = vmul.f32 %v428_v13, %v428_v13  ;;  %v455_v32 = vmul.f32 %v429_v14, %v429_v14  ;;  %v456_v35 = vmul.f32 %v430_v15, %v430_v15  ;;  %v457_v37 = vmul.f32 %v431_v18, %v431_v18 }
 0x15c   :  { %v464_v27 = vadd.f32 %v452_v20, %v451_v26  ;;  %v458_v38 = vmul.f32 %v432_v19, %v432_v19  ;;  %v459_v39 = vmul.f32 %v433_v22, %v433_v22  ;;  %v460_v41 = vmul.f32 %v434_v23, %v434_v23 }
 0x15d   :  { %v461_v42 = vmul.f32 %v435_v24, %v435_v24  ;;  %v450_v43 = vsel %vm356_vm1, %v437_v16, 0.0  ;;  %v462_v44 = vmul.f32 %v436_v25, %v436_v25 }
 0x15e   :  { %v465_v31 = vadd.f32 %v464_v27, %v453_v29  ;;  %v463_v46 = vmul.f32 %v450_v43, %v450_v43 }
 0x160   :  { %v466_v34 = vadd.f32 %v465_v31, %v454_v30 }
 0x162   :  { %v467_v36 = vadd.f32 %v466_v34, %v455_v32 }
 0x164   :  { %v468_v17 = vadd.f32 %v467_v36, %v456_v35 }
 0x166   :  { %v469_v21 = vadd.f32 %v468_v17, %v457_v37 }
 0x168   :  { %v470_v28 = vadd.f32 %v469_v21, %v458_v38 }
 0x16a   :  { %v471_v33 = vadd.f32 %v470_v28, %v459_v39 }
 0x16c   :  { %v472_v40 = vadd.f32 %v471_v33, %v460_v41 }
 0x16e   :  { %v473_v45 = vadd.f32 %v472_v40, %v461_v42 }
 0x170   :  { %v474_v47 = vadd.f32 %v473_v45, %v462_v44 }
 0x172   :  { %v475_v48 = vadd.f32 %v474_v47, %v463_v46 }
 0x174   :  { %v476_v49 = vrot.slane %v475_v48, 4 }
 0x176   :  { %v477_v50 = vadd.f32 %v476_v49, %v475_v48 }
 0x178   :  { %v478_v51 = vrot.slane %v477_v50, 2 }
 0x17a   :  { %v479_v52 = vadd.f32 %v478_v51, %v477_v50 }
 0x17c   :  { %v480_v53 = vrot.slane %v479_v52, 1 }
 0x17e   :  { %v481_v54 = vadd.f32 %v480_v53, %v479_v52 }
 0x180   :  { %v483_v55 = vsel %vm482_vm2, %v419_v8, %v481_v54 }
 0x181   :  { %v485_v56 = vsel %vm484_vm3, %v483_v55, 0.0 }
 0x182   :  { %486 = vst [vmem:[#allocation8] sm:$0xff] %v485_v56 }
 0x183   :  { %770 = shalt.err (!%p767_p0)
}
 0x184   :  { %s771_s25 = scalar_lea.hbm %s937_s3, 128 }
 0x185   :  { %p772_p1 = scmp.ne.s32.totalorder %s937_s3, %s771_s25  ;;  %p775_p2 = scmp.lt.u32.totalorder %s771_s25, %s937_s3 }
 0x187   :  { %p777_p3 = pnand %p775_p2, %p772_p1 }
 0x189   :  { %780 = shalt.err (!%p777_p3)
}
 0x18a   :  { %508 = dma.vmem_to_hbm [thread:$0]  %s506_s21, 128, %s937_s3, [#allocation9]  }
 0x18b   :  { %785 = dma.done.wait [#allocation4], 832  }
 0x18c   :  { %786 = vsyncadd [#allocation4], 4294966464 }
 0x18d   :  { %787 = dma.done.wait [#allocation9], 128  }
 0x18e   :  { %788 = vsyncadd [#allocation9], 4294967168 }
 0x18f   :  { %515 = vsyncpa [#allocation3], 1 }
 0x190   :  { %516 = vsyncpa [#allocation6], 1 }
 0x191   :  { %517 = vsyncpa [#allocation4], 1 }
 0x192   :  { %518 = vsyncpa [#allocation9], 1 }

</bundles_post_ra>
